<compile_context>
chip_gen: v7x
topology: tpu7x:2x2x1
jax: 0.10.0
libtpu: 0.0.40
codegen_flags: <defaults>
</compile_context>

<pallas_src>
import jax
import jax.numpy as jnp
from jax import lax
from jax.experimental import pallas as pl
from jax.experimental.pallas import tpu as pltpu


def pair_classifier_kernel(para_ref, ids_ref, p1_ref, p2_ref, out_ref):
    # para: (N, H) f32 ; ids: (N, 1) i32 ; p1 = [w1; b1]: (2H+1, 2H) ; p2 = [w2; b2]: (2H+1, C)
    para = para_ref[...]                                    # (N, H)
    n, h = para.shape

    # Fused gather: prev[i] = para[ids[i]] via one-hot matmul (MXU, no scalar loop).
    # TODO(synk): for large N (hundreds of paragraphs) switch to a scalar-prefetch
    # gather (ids in SMEM + per-row dynamic loads) to avoid the O(N^2) one-hot.
    ids = ids_ref[...]                                      # (N, 1) int32
    col = lax.broadcasted_iota(jnp.int32, (n, n), 1)        # (N, N)
    onehot = (col == ids).astype(para.dtype)                # (N, N)
    prev = jnp.dot(onehot, para, preferred_element_type=jnp.float32)   # (N, H)

    # Linear(2H, 2H): W1 consumed as prev-half / para-half (static, sublane-aligned
    # slices), so the (N, 2H) concat slab is never materialized.
    w1_prev = p1_ref[:h, :]                                 # (H, 2H)
    w1_para = p1_ref[h:2 * h, :]                            # (H, 2H)
    b1 = p1_ref[2 * h:2 * h + 1, :]                         # (1, 2H)
    hid = (jnp.dot(prev, w1_prev, preferred_element_type=jnp.float32)
           + jnp.dot(para, w1_para, preferred_element_type=jnp.float32)
           + b1)
    hid = jnp.maximum(hid, 0.0)                             # ReLU

    # Linear(2H, C) + Tanh
    w2 = p2_ref[:2 * h, :]                                  # (2H, C)
    b2 = p2_ref[2 * h:2 * h + 1, :]                         # (1, C)
    logits = jnp.tanh(
        jnp.dot(hid, w2, preferred_element_type=jnp.float32) + b2
    )                                                       # (N, C)

    # Softmax over the label dim. Tanh bounds logits to [-1, 1], so the usual
    # max-subtraction is numerically unnecessary; exact divide keeps rows summing to 1.
    e = jnp.exp(logits)                                     # (N, C)
    denom = jnp.sum(e, axis=-1, keepdims=True)              # (N, 1)
    out_ref[...] = e / denom                                # full (N, C); row 0 dropped in wrapper


def init_params(key, input_dims, output_dims):
    # Deterministic synthetic init (PyTorch Linear-style uniform +-1/sqrt(fan_in)),
    # packed at init time into two slabs: [w1; b1] and [w2; b2].
    k1, k2, k3, k4 = jax.random.split(key, 4)
    lim1 = 1.0 / jnp.sqrt(jnp.float32(input_dims))
    w1 = jax.random.uniform(k1, (input_dims, input_dims), jnp.float32, -lim1, lim1)
    b1 = jax.random.uniform(k2, (1, input_dims), jnp.float32, -lim1, lim1)
    w2 = jax.random.uniform(k3, (input_dims, output_dims), jnp.float32, -lim1, lim1)
    b2 = jax.random.uniform(k4, (1, output_dims), jnp.float32, -lim1, lim1)
    p1 = jnp.concatenate([w1, b1], axis=0)                  # (2H+1, 2H)
    p2 = jnp.concatenate([w2, b2], axis=0)                  # (2H+1, C)
    return p1, p2


def pair_classifier_forward(paragraphs, previous_ids, params):
    """paragraphs: (B, N, H) f32 ; previous_ids: (B, N) int32 -> ((B, N-1, C), None)

    Each grid step processes one document (per-document gather, shared params).
    """
    B, N, H = paragraphs.shape
    p1, p2 = params
    C = p2.shape[1]
    ids3d = previous_ids.reshape(B, N, 1).astype(jnp.int32)

    scores_full = pl.pallas_call(
        pair_classifier_kernel,
        out_shape=jax.ShapeDtypeStruct((B, N, C), jnp.float32),
        grid=(B,),
        in_specs=[
            pl.BlockSpec((None, N, H), lambda b: (b, 0, 0)),      # per-doc paragraphs
            pl.BlockSpec((None, N, 1), lambda b: (b, 0, 0)),      # per-doc previous ids
            pl.BlockSpec((2 * H + 1, 2 * H), lambda b: (0, 0)),   # packed w1|b1 (resident)
            pl.BlockSpec((2 * H + 1, C), lambda b: (0, 0)),       # packed w2|b2 (resident)
        ],
        out_specs=pl.BlockSpec((None, N, C), lambda b: (b, 0, 0)),
        compiler_params=pltpu.CompilerParams(
            dimension_semantics=("parallel",)),                   # shard docs across TCs on v7x
    )(paragraphs, ids3d, p1, p2)

    # Row 0 has no real predecessor; drop it in the wrapper (free, fuses downstream).
    scores = scores_full[:, 1:, :]                                # (B, N-1, C)

    loss = None  # golden=None path
    # TODO(synk): training-time CrossEntropyLoss masking path (golden != None) not implemented.
    return scores, loss


def _reference_forward(paragraphs, previous_ids, params):
    """Pure-JAX reference mirroring the PyTorch module (applied per document)."""
    p1, p2 = params
    h2 = p1.shape[1]
    w1, b1 = p1[:h2, :], p1[h2:h2 + 1, :]
    w2, b2 = p2[:h2, :], p2[h2:h2 + 1, :]

    def one_doc(para, ids):
        prev = jnp.take(para, ids, axis=0)
        x = jnp.concatenate([prev, para], axis=-1)
        hid = jnp.maximum(x @ w1 + b1, 0.0)
        logits = jnp.tanh(hid @ w2 + b2)
        return jax.nn.softmax(logits[1:, :], axis=-1)

    return jax.vmap(one_doc)(paragraphs, previous_ids)


if __name__ == "__main__":
    key = jax.random.PRNGKey(0)
    k_par, k_param = jax.random.split(key)

    # Small shapes consistent with the module: B=2 documents, N=8 paragraphs each,
    # hidden=32, so input_dims (concat of head+tail) = 64, output_dims = 3.
    B, N, H = 2, 8, 32
    input_dims, output_dims = 2 * H, 3

    paragraphs = jax.random.normal(k_par, (B, N, H), dtype=jnp.float32)
    # previous_ids[b, i] = index of the previous same-level paragraph (0 -> none).
    previous_ids = jnp.array([[0, 0, 1, 2, 3, 0, 5, 6],
                              [0, 0, 0, 2, 1, 4, 5, 0]], dtype=jnp.int32)

    params = init_params(k_param, input_dims, output_dims)

    scores, loss = pair_classifier_forward(paragraphs, previous_ids, params)
    scores = jax.block_until_ready(scores)

    ref = _reference_forward(paragraphs, previous_ids, params)
    assert scores.shape == (B, N - 1, output_dims)
    assert loss is None
    assert jnp.allclose(scores, ref, atol=1e-5, rtol=1e-5)
    # exact normalization (no approx reciprocal): rows sum to 1
    assert jnp.allclose(jnp.sum(scores, axis=-1), 1.0, atol=1e-5)

    print("KERNEL_OK")
</pallas_src>

<mosaic_0001>
module attributes {stable_mosaic.version = 11 : i64} {
  func.func @pair_classifier_kernel(%arg0: i32, %arg1: memref<1x8x32xf32, #tpu.memory_space<vmem>>, %arg2: memref<1x8x1xi32, #tpu.memory_space<vmem>>, %arg3: memref<65x64xf32, #tpu.memory_space<vmem>>, %arg4: memref<65x3xf32, #tpu.memory_space<vmem>>, %arg5: memref<1x8x3xf32, #tpu.memory_space<vmem>>) attributes {dimension_semantics = [#tpu.dimension_semantics<parallel>], iteration_bounds = array<i64: 2>, scalar_prefetch = 0 : i64, scratch_operands = 0 : i64, tpu.core_type = #tpu.core_type<tc>, window_params = [{transform_indices = @transform_0, window_bounds = array<i64: 1, 8, 32>}, {transform_indices = @transform_1, window_bounds = array<i64: 1, 8, 1>}, {pipeline_mode = #tpu.pipeline_mode<synchronous>, transform_indices = @transform_2, window_bounds = array<i64: 65, 64>}, {pipeline_mode = #tpu.pipeline_mode<synchronous>, transform_indices = @transform_3, window_bounds = array<i64: 65, 3>}, {transform_indices = @transform_4, window_bounds = array<i64: 1, 8, 3>}]} {
    %c0 = arith.constant 0 : index
    %c0_0 = arith.constant 0 : index
    %c0_1 = arith.constant 0 : index
    %0 = vector.load %arg1[%c0, %c0_0, %c0_1] : memref<1x8x32xf32, #tpu.memory_space<vmem>>, vector<1x8x32xf32>
    %1 = vector.shape_cast %0 : vector<1x8x32xf32> to vector<8x32xf32>
    %c0_2 = arith.constant 0 : index
    %c0_3 = arith.constant 0 : index
    %c0_4 = arith.constant 0 : index
    %2 = vector.load %arg2[%c0_2, %c0_3, %c0_4] : memref<1x8x1xi32, #tpu.memory_space<vmem>>, vector<1x8x1xi32>
    %3 = vector.shape_cast %2 : vector<1x8x1xi32> to vector<8x1xi32>
    %4 = tpu.iota {dimensions = array<i32: 1>} : vector<8x8xi32>
    %5 = vector.broadcast %3 : vector<8x1xi32> to vector<8x8xi32>
    %6 = arith.cmpi eq, %4, %5 : vector<8x8xi32>
    %7 = arith.extui %6 : vector<8x8xi1> to vector<8x8xi32>
    %8 = arith.sitofp %7 : vector<8x8xi32> to vector<8x8xf32>
    %cst = arith.constant dense<0.000000e+00> : vector<8x32xf32>
    %9 = tpu.matmul %8, %1, %cst {dimension_numbers = #tpu.dot_dimension_numbers<[1], [0], [0], [1], [0, 0, 1, 1], [], []>} : vector<8x8xf32>, vector<8x32xf32>, vector<8x32xf32> -> vector<8x32xf32>
    %c0_5 = arith.constant 0 : index
    %c0_6 = arith.constant 0 : index
    %10 = vector.load %arg3[%c0_5, %c0_6] : memref<65x64xf32, #tpu.memory_space<vmem>>, vector<32x64xf32>
    %c32 = arith.constant 32 : index
    %c0_7 = arith.constant 0 : index
    %11 = vector.load %arg3[%c32, %c0_7] : memref<65x64xf32, #tpu.memory_space<vmem>>, vector<32x64xf32>
    %c64 = arith.constant 64 : index
    %c0_8 = arith.constant 0 : index
    %12 = vector.load %arg3[%c64, %c0_8] : memref<65x64xf32, #tpu.memory_space<vmem>>, vector<1x64xf32>
    %cst_9 = arith.constant dense<0.000000e+00> : vector<8x64xf32>
    %13 = tpu.matmul %9, %10, %cst_9 {dimension_numbers = #tpu.dot_dimension_numbers<[1], [0], [0], [1], [0, 0, 1, 1], [], []>} : vector<8x32xf32>, vector<32x64xf32>, vector<8x64xf32> -> vector<8x64xf32>
    %cst_10 = arith.constant dense<0.000000e+00> : vector<8x64xf32>
    %14 = tpu.matmul %1, %11, %cst_10 {dimension_numbers = #tpu.dot_dimension_numbers<[1], [0], [0], [1], [0, 0, 1, 1], [], []>} : vector<8x32xf32>, vector<32x64xf32>, vector<8x64xf32> -> vector<8x64xf32>
    %15 = arith.addf %13, %14 : vector<8x64xf32>
    %16 = vector.broadcast %12 : vector<1x64xf32> to vector<8x64xf32>
    %17 = arith.addf %15, %16 : vector<8x64xf32>
    %cst_11 = arith.constant 0.000000e+00 : f32
    %18 = vector.broadcast %cst_11 : f32 to vector<8x64xf32>
    %19 = arith.maximumf %17, %18 : vector<8x64xf32>
    %c0_12 = arith.constant 0 : index
    %c0_13 = arith.constant 0 : index
    %20 = vector.load %arg4[%c0_12, %c0_13] : memref<65x3xf32, #tpu.memory_space<vmem>>, vector<64x3xf32>
    %c64_14 = arith.constant 64 : index
    %c0_15 = arith.constant 0 : index
    %21 = vector.load %arg4[%c64_14, %c0_15] : memref<65x3xf32, #tpu.memory_space<vmem>>, vector<1x3xf32>
    %cst_16 = arith.constant dense<0.000000e+00> : vector<8x3xf32>
    %22 = tpu.matmul %19, %20, %cst_16 {dimension_numbers = #tpu.dot_dimension_numbers<[1], [0], [0], [1], [0, 0, 1, 1], [], []>} : vector<8x64xf32>, vector<64x3xf32>, vector<8x3xf32> -> vector<8x3xf32>
    %23 = vector.broadcast %21 : vector<1x3xf32> to vector<8x3xf32>
    %24 = arith.addf %22, %23 : vector<8x3xf32>
    %25 = math.tanh %24 : vector<8x3xf32>
    %26 = math.exp %25 : vector<8x3xf32>
    %cst_17 = arith.constant dense<0.000000e+00> : vector<8xf32>
    %27 = vector.multi_reduction <add>, %26, %cst_17 [1] : vector<8x3xf32> to vector<8xf32>
    %28 = vector.shape_cast %27 : vector<8xf32> to vector<8x1xf32>
    %29 = vector.broadcast %28 : vector<8x1xf32> to vector<8x3xf32>
    %30 = arith.divf %26, %29 : vector<8x3xf32>
    %c0_18 = arith.constant 0 : index
    %c0_19 = arith.constant 0 : index
    %c0_20 = arith.constant 0 : index
    %31 = vector.load %arg5[%c0_18, %c0_19, %c0_20] : memref<1x8x3xf32, #tpu.memory_space<vmem>>, vector<1x8x3xf32>
    %32 = vector.shape_cast %31 : vector<1x8x3xf32> to vector<8x3xf32>
    %33 = vector.shape_cast %30 : vector<8x3xf32> to vector<1x8x3xf32>
    tpu.vector_store %arg5[%c0_18, %c0_19, %c0_20], %33 {strides = array<i32>} : memref<1x8x3xf32, #tpu.memory_space<vmem>>, vector<1x8x3xf32>,
    return
  }
  func.func @transform_0(%arg0: i32) -> (i32, i32, i32) {
    %c0_i32 = arith.constant 0 : i32
    %c0_i32_0 = arith.constant 0 : i32
    %c0_i32_1 = arith.constant 0 : i32
    return %arg0, %c0_i32, %c0_i32_0 : i32, i32, i32
  }
  func.func @transform_1(%arg0: i32) -> (i32, i32, i32) {
    %c0_i32 = arith.constant 0 : i32
    %c0_i32_0 = arith.constant 0 : i32
    %c0_i32_1 = arith.constant 0 : i32
    return %arg0, %c0_i32, %c0_i32_0 : i32, i32, i32
  }
  func.func @transform_2(%arg0: i32) -> (i32, i32) {
    %c0_i32 = arith.constant 0 : i32
    %c0_i32_0 = arith.constant 0 : i32
    %c0_i32_1 = arith.constant 0 : i32
    return %c0_i32, %c0_i32_0 : i32, i32
  }
  func.func @transform_3(%arg0: i32) -> (i32, i32) {
    %c0_i32 = arith.constant 0 : i32
    %c0_i32_0 = arith.constant 0 : i32
    %c0_i32_1 = arith.constant 0 : i32
    return %c0_i32, %c0_i32_0 : i32, i32
  }
  func.func @transform_4(%arg0: i32) -> (i32, i32, i32) {
    %c0_i32 = arith.constant 0 : i32
    %c0_i32_0 = arith.constant 0 : i32
    %c0_i32_1 = arith.constant 0 : i32
    return %arg0, %c0_i32, %c0_i32_0 : i32, i32, i32
  }
}

</mosaic_0001>

<bundles_post_ra>
// kernel: tpu_custom_call.1
= control target key start
LH: loop header
LB: loop body
LE: loop exit
PB: predicated region body
PF: predicated region fallthrough
CT: control target
= control target key end

     0   :  { %s782_s15 = smov 0   ;;  %s867_s0 = inlined_call_operand.vmem [shape: f32[2,8,32], index: 0, kind: input, shape index: {}]   ;;  %s868_s1 = inlined_call_operand.vmem [shape: s32[2,8,1], index: 1, kind: input, shape index: {}]   ;;  %s869_s2 = inlined_call_operand.vmem [shape: f32[65,64], index: 2, kind: input, shape index: {}]   ;;  %s870_s3 = inlined_call_operand.vmem [shape: f32[65,3], index: 3, kind: input, shape index: {}]   ;;  %s871_s4 = inlined_call_operand.vmem [shape: f32[2,8,3], index: 4, kind: output, shape index: {}]  }
   0x1 LB: > { %s618_s16 = sadd.s32 4294967295, %s751_s15   ;;  %p622_p0 = scmp.ge.s32.totalorder %s751_s15, 1  ;;  %s751_s15 = sphi %s782_s15, %s14_s15  }
   0x2   : > { %p170_p1 = scmp.lt.s32.totalorder %s751_s15, 3 }
   0x4   : > { %p171_p2 = pnand %p622_p0, %p170_p1 }
   0x5   : > { %p198_p3 = scmp.lt.s32.totalorder (!%p171_p2), %s618_s16, 1  ;;  %v753_v0 = vmov (!%p171_p2), 0   ;;  %v754_v1 = vmov (!%p171_p2), 0.0   ;;  %vm755_vm0 = vmmov (!%p171_p2), 0   ;;  %v756_v4 = vmov (!%p171_p2), 0.0|0.0   ;;  %v298_v7 = vld [vmem:[%s869_s2 + $0x20] sm:$0xff] (!%p171_p2) }
   0x6   : > { %174 = sbr.rel (%p171_p2) target bundleno = 972 (0x3cc), region = 36  ;;  %738 = vset.pattern.permute.xlu0 (!%p171_p2), %v753_v0  ;;  %656 = vmatprep.subr.mxu0 (!%p171_p2), %v754_v1  ;;  %v212_v5 = vlaneseq (!%p171_p2)  ;;  %v299_v8 = vld [vmem:[%s869_s2 + $0x28] sm:$0xff] (!%p171_p2)  ;;  %vm220_vm1 = vcmask (!%p171_p2), 64512   ;;  %v300_v11 = vld [vmem:[%s869_s2 + $0x30] sm:$0xff] (!%p171_p2)  ;;  %v301_v12 = vld [vmem:[%s869_s2 + $0x38] sm:$0xff] (!%p171_p2)  ;;  %vm303_vm3 = vcmask (!%p171_p2), 261120  }
   0x7   : > { %658 = vmatprep.mubr.msk.f32.mxu0 (!%p171_p2), %vm755_vm0, %v754_v1  ;;  %699 = vmatprep.mubr.msk.f32.mxu1 (!%p171_p2), %vm755_vm0, %v754_v1  ;;  %v703_v10 = vpack.c.bf16 (!%p171_p2), %v299_v8, %v298_v7  ;;  %v706_v14 = vpack.c.bf16 (!%p171_p2), %v301_v12, %v300_v11  ;;  %v294_v15 = vld [vmem:[%s869_s2] sm:$0xff] (!%p171_p2)  ;;  %v295_v16 = vld [vmem:[%s869_s2 + $0x8] sm:$0xff] (!%p171_p2)  ;;  %v296_v18 = vld [vmem:[%s869_s2 + $0x10] sm:$0xff] (!%p171_p2)  ;;  %vm469_vm4 = vcmask (!%p171_p2), 523264   ;;  %vm546_vm5 = vcmask (!%p171_p2), 23552  }
   0x8   : > { %714 = vmatprep.subr.bf16.mxu1 (!%p171_p2), %v756_v4  ;;  %v213_v6 = vand.u32 (!%p171_p2), 127, %v212_v5  ;;  %v709_v17 = vpack.c.bf16 (!%p171_p2), %v295_v16, %v294_v15  ;;  %v297_v19 = vld [vmem:[%s869_s2 + $0x18] sm:$0xff] (!%p171_p2)  ;;  %v456_v21 = vld [vmem:[%s870_s3] sm:$0xff] (!%p171_p2)  ;;  %v457_v22 = vld [vmem:[%s870_s3 + $0x8] sm:$0xff] (!%p171_p2) }
   0x9   : > { %v712_v20 = vpack.c.bf16 (!%p171_p2), %v297_v19, %v296_v18  ;;  %v715_v23 = vpack.c.bf16 (!%p171_p2), %v457_v22, %v456_v21  ;;  %v458_v24 = vld [vmem:[%s870_s3 + $0x10] sm:$0xff] (!%p171_p2)  ;;  %v459_v25 = vld [vmem:[%s870_s3 + $0x18] sm:$0xff] (!%p171_p2)  ;;  %v460_v31 = vld [vmem:[%s870_s3 + $0x20] sm:$0xff] (!%p171_p2) }
   0xa   : > { %v718_v26 = vpack.c.bf16 (!%p171_p2), %v459_v25, %v458_v24  ;;  %v461_v32 = vld [vmem:[%s870_s3 + $0x28] sm:$0xff] (!%p171_p2)  ;;  %v462_v34 = vld [vmem:[%s870_s3 + $0x30] sm:$0xff] (!%p171_p2)  ;;  %v463_v35 = vld [vmem:[%s870_s3 + $0x38] sm:$0xff] (!%p171_p2) }
   0xb   : > { %716 = vmatpush3.bf16.msra.mxu1 (!%p171_p2), %v715_v23  ;;  %v721_v33 = vpack.c.bf16 (!%p171_p2), %v461_v32, %v460_v31  ;;  %v724_v36 = vpack.c.bf16 (!%p171_p2), %v463_v35, %v462_v34  ;;  %v630_v37 = vld [vmem:[%s869_s2 + $0x40] ss:$0 sm:$0xff] (!%p171_p2) }
   0xc   : > { %717 = vmatprep.subr.bf16.mxu1 (!%p171_p2), %v756_v4  ;;  %v631_v43 = vld [vmem:[%s870_s3 + $0x40] ss:$0 sm:$0xff] (!%p171_p2) }
   0xd   : > { %s873_s16 = smov (!%p198_p3, %s618_s16), 1 }
   0xe   : > { %s790_s17 = sshll.u32 %s873_s16, 3 }
   0xf   : > { %s205_s20 = scalar_lea.vmem %s868_s1, %s790_s17  ;;  %s201_s23 = scalar_lea.vmem %s867_s0, %s790_s17  ;;  %719 = vmatpush3.bf16.msra.mxu1 %v718_v26 }
  0x10   : > { %v211_v2 = vld [vmem:[%s205_s20] sm:$0xff]  ;;  %720 = vmatprep.subr.bf16.mxu1 %v756_v4  ;;  %s209_s12 = scalar_lea.vmem %s871_s4, %s790_s17 }
  0x11   : > { %215 = vperm.xlu0 %738, %v211_v2   ;;  %v210_v3 = vld [vmem:[%s201_s23] sm:$0xff] }
  0x12   : > { %657 = vmatpush3.msra.mxu0 %v210_v3 }
  0x13   : > { %702 = vmatprep.subr.bf16.mxu0 %v756_v4  ;;  %722 = vmatpush3.bf16.msra.mxu1 %v721_v33 }
  0x14   : > { %723 = vmatprep.subr.bf16.mxu1 %v756_v4 }
  0x17   : > { %725 = vmatpush3.bf16.msra.mxu1 %v724_v36 }
  0x90   : > { %v216_v9 = vpop.permute.xlu0 %215 }
  0x91   : > { %vm217_vm2 = vcmp.eq.s32.totalorder %v213_v6, %v216_v9 }
  0x92   : > { %v626_v13 = vsel %vm217_vm2, 1.0, %v754_v1 }
  0x93   : > { %659 = vmatmul.mubr.msk.f32.vlgmr.msra.gmra.mrb[0].mxu0 %vm220_vm1, %v626_v13 }
  0x94   : > { %704 = vmatpush3.bf16.msra.mxu0 %v703_v10  ;;  %669 = vmatprep.mubr.msk.f32.mxu0 %vm755_vm0, %v754_v1 }
  0x95   : > { %705 = vmatprep.subr.bf16.mxu0 %v756_v4 }
  0x98   : > { %707 = vmatpush3.bf16.msra.mxu0 %v706_v14 }
  0x99   : > { %708 = vmatprep.subr.bf16.mxu0 %v756_v4 }
  0x9b   : > { %670 = vmatmul.mubr.msk.f32.vlgmr.msra.gmra.mrb[2].mxu0 %vm303_vm3, %v210_v3 }
  0x9c   : > { %710 = vmatpush3.bf16.msra.mxu0 %v709_v17  ;;  %680 = vmatprep.mubr.msk.f32.mxu0 %vm755_vm0, %v754_v1 }
  0x9d   : > { %711 = vmatprep.subr.bf16.mxu0 %v756_v4 }
  0xa0   : > { %713 = vmatpush3.bf16.msra.mxu0 %v712_v20 }
 0x166   : > { %v290_v27 = vpop.f32.mrb[0].mxu0 }
 0x167   : > { %v660_v28 = vpop.f32.mrb[1].mxu0  ;;  %681 = vmatmul.mubr.msk.f32.vlgmr.msra.gmra.mrb[4].mxu0 %vm303_vm3, %v290_v27 }
 0x16e   : > { %v373_v29 = vpop.f32.mrb[2].mxu0 }
 0x16f   : > { %v671_v30 = vpop.f32.mrb[3].mxu0 }
 0x23a   : > { %v446_v38 = vpop.f32.mrb[4].mxu0 }
 0x23b   : > { %v447_v39 = vadd.f32 %v446_v38, %v373_v29  ;;  %v682_v40 = vpop.f32.mrb[5].mxu0 }
 0x23d   : > { %v454_v41 = vadd.f32 %v630_v37, %v447_v39 }
 0x23f   : > { %v455_v42 = vmax.f32 %v454_v41, 0.0 }
 0x241   : > { %700 = vmatmul.mubr.msk.f32.vlgmr.msra.gmra.mrb[0].mxu1 %vm469_vm4, %v455_v42 }
 0x314   : > { %v539_v44 = vpop.f32.mrb[0].mxu1 }
 0x315   : > { %v540_v45 = vadd.f32 %v631_v43, %v539_v44  ;;  %v701_v46 = vpop.f32.mrb[1].mxu1 }
 0x317   : > { %739 = vtanh.f32 %v540_v45 }
 0x321   : > { %v740_v47 = vpop.eup %739 }
 0x322   : > { %v544_v48 = vmul.f32 1.442695, %v740_v47 }
 0x324   : > { %741 = vpow2.f32 %v544_v48 }
 0x32e   : > { %v742_v49 = vpop.eup %741 }
 0x32f   : > { %v547_v50 = vsel %vm546_vm5, %v742_v49, 0.0 }
 0x330   : > { %548 = vadd.xlane.f32.xlu0 %v547_v50 }
 0x3bd   : > { %v549_v51 = vpop.xlane.xlu0 %548 }
 0x3be   : > { %743 = vrcp.f32 %v549_v51 }
 0x3c8   : > { %v744_v52 = vpop.eup %743 }
 0x3c9   : > { %v551_v53 = vmul.f32 %v744_v52, %v742_v49 }
 0x3cb   : > { %552 = vst.msk [vmem:[%s209_s12] sm:$0xff] %vm546_vm5, %v551_v53 }
 0x3cc PF: > { %s14_s15 = sadd.s32 1, %s751_s15  }
 0x3cd   : > { %p11_p4 = scmp.ge.s32.totalorder %s14_s15, 4  }
 0x3cf   :  { %13 = sbr.rel (!%p11_p4) target bundleno = 1 (0x1), region = 69 }

</bundles_post_ra>
